<compile_context>
chip_gen: v5e
topology: v5e:2x2
jax: 0.10.0
libtpu: 0.0.40
codegen_flags: <defaults>
</compile_context>

<pallas_src>
import jax
import jax.numpy as jnp
from jax import lax
from jax.experimental import pallas as pl
from jax.experimental.pallas import tpu as pltpu


# ----------------------------------------------------------------------------
# Fused decoder-step kernel (single program, loop over layers inside)
# ----------------------------------------------------------------------------
def _decoder_step_kernel(x0_ref, w_ref, b_ref, h0_ref, c0_ref, fcw_ref, fcb_ref,
                         pred_ref, hn_ref, cn_ref, xh_ref):
    """Shapes:
      x0:(B,E) f32            embedded+dropout(id) tokens
      w: (L, Dmax+H, 4H) bf16 fused per-layer gate panel [rows: x | h], gates [i,f,g,o]
      b: (L, 1, 4H)      f32  fused bias (b_ih + b_hh)
      h0,c0:(L,B,H)      f32
      fcw:(H,O) bf16  fcb:(1,O) f32
      pred:(B,O) f32  hn,cn:(L,B,H) f32
      xh (VMEM scratch): (B, Dmax+H) f32   carried [x | h_prev] activation
    """
    L, B, H = h0_ref.shape
    E = x0_ref.shape[1]
    Dmax = xh_ref.shape[1] - H

    # Init the carried activation. Zero the whole scratch once so the padded
    # x-tail lanes (beyond the layer's true input width) are finite; they hit
    # zero-padded weight rows and contribute nothing.
    xh_ref[...] = jnp.zeros_like(xh_ref)
    xh_ref[:, :E] = x0_ref[...]          # dropout(embedded) == identity in eval

    def layer(l, _h_top):
        h_prev = h0_ref[l]               # (B, H) f32
        c_prev = c0_ref[l]               # (B, H) f32
        xh_ref[:, Dmax:Dmax + H] = h_prev

        # One fused MXU matmul per layer: (B, Dmax+H) @ (Dmax+H, 4H) -> (B, 4H)
        z = (jnp.dot(xh_ref[...].astype(jnp.bfloat16), w_ref[l],
                     preferred_element_type=jnp.float32)
             + b_ref[l])                 # (B, 4H) f32, gate-major [i,f,g,o]

        i_g = jax.nn.sigmoid(z[:, 0 * H:1 * H])
        f_g = jax.nn.sigmoid(z[:, 1 * H:2 * H])
        g_g = jnp.tanh(z[:, 2 * H:3 * H])
        o_g = jax.nn.sigmoid(z[:, 3 * H:4 * H])

        c_new = f_g * c_prev + i_g * g_g
        h_new = o_g * jnp.tanh(c_new)

        hn_ref[l] = h_new
        cn_ref[l] = c_new
        # Carry activation to the next layer: partial write only (no pad).
        # Valid because W rows [H:Dmax) are zero for layers > 0.
        xh_ref[:, :H] = h_new
        return h_new

    h_top = lax.fori_loop(0, L, layer, jnp.zeros((B, H), jnp.float32),
                          unroll=True)

    # fc_out on the top-layer hidden state
    pred_ref[...] = (jnp.dot(h_top.astype(jnp.bfloat16), fcw_ref[...],
                             preferred_element_type=jnp.float32)
                     + fcb_ref[...])


# ----------------------------------------------------------------------------
# Wrapper: embedding gather in XLA (B rows only), one pallas_call for the rest
# ----------------------------------------------------------------------------
@jax.jit
def decoder_forward(params, tokens, hidden):
    """tokens: (B,) int32; hidden = (h0, c0), each (n_layers, B, H).
    Returns (prediction (B, output_dim), (h_n, c_n))."""
    h0, c0 = hidden
    L, B, H = h0.shape
    E = params["emb"].shape[1]
    Dmax = params["w"].shape[1] - H
    O = params["fc_w"].shape[-1]

    # nn.Embedding lookup (+ dropout == identity in eval mode)
    x0 = jnp.take(params["emb"], tokens.astype(jnp.int32), axis=0)   # (B, E)

    full2 = lambda i: (0, 0)
    full3 = lambda i: (0, 0, 0)

    pred, h_n, c_n = pl.pallas_call(
        _decoder_step_kernel,
        grid=(1,),
        in_specs=[
            pl.BlockSpec((B, E), full2),                  # embedded tokens
            pl.BlockSpec((L, Dmax + H, 4 * H), full3),    # fused gate weight panel (bf16)
            pl.BlockSpec((L, 1, 4 * H), full3),           # fused bias
            pl.BlockSpec((L, B, H), full3),               # h0
            pl.BlockSpec((L, B, H), full3),               # c0
            pl.BlockSpec((H, O), full2),                  # fc_out.weight^T (bf16)
            pl.BlockSpec((1, O), full2),                  # fc_out.bias
        ],
        out_specs=(
            pl.BlockSpec((B, O), full2),                  # prediction
            pl.BlockSpec((L, B, H), full3),               # h_n
            pl.BlockSpec((L, B, H), full3),               # c_n
        ),
        out_shape=(
            jax.ShapeDtypeStruct((B, O), jnp.float32),
            jax.ShapeDtypeStruct((L, B, H), jnp.float32),
            jax.ShapeDtypeStruct((L, B, H), jnp.float32),
        ),
        scratch_shapes=[pltpu.VMEM((B, Dmax + H), jnp.float32)],   # [x | h] carry
        compiler_params=pltpu.CompilerParams(
            dimension_semantics=("arbitrary",),
            vmem_limit_bytes=32 * 1024 * 1024,            # explicit (v5e default is 16 MiB)
        ),
    )(x0, params["w"], params["b"], h0, c0, params["fc_w"], params["fc_b"])

    return pred, (h_n, c_n)


# ----------------------------------------------------------------------------
# Deterministic parameter init (shapes mirror Decoder.__init__, pre-packed into
# the fused gate-major layout the kernel consumes; streamed weights in bf16)
# ----------------------------------------------------------------------------
def init_params(key, output_dim, emb_dim, hid_dim, n_layers):
    dmax = max(emb_dim, hid_dim)
    ks = jax.random.split(key, 3 + 4 * n_layers)
    k = 1.0 / jnp.sqrt(hid_dim)

    def u(kk, shape):
        return jax.random.uniform(kk, shape, jnp.float32, minval=-k, maxval=k)

    w, b = [], []
    for layer in range(n_layers):
        d_in = emb_dim if layer == 0 else hid_dim
        base = 3 + 4 * layer
        w_ih = u(ks[base + 0], (d_in, 4 * hid_dim))            # W_ih^T, gates [i,f,g,o]
        w_ih = jnp.pad(w_ih, ((0, dmax - d_in), (0, 0)))       # zero rows beyond d_in
        w_hh = u(ks[base + 1], (hid_dim, 4 * hid_dim))         # W_hh^T
        w.append(jnp.concatenate([w_ih, w_hh], axis=0))        # (Dmax+H, 4H)
        b_ih = u(ks[base + 2], (1, 4 * hid_dim))
        b_hh = u(ks[base + 3], (1, 4 * hid_dim))
        b.append(b_ih + b_hh)                                  # fused bias

    return {
        "emb": jax.random.normal(ks[0], (output_dim, emb_dim), jnp.float32),
        "w": jnp.stack(w).astype(jnp.bfloat16),                # (L, Dmax+H, 4H)
        "b": jnp.stack(b),                                     # (L, 1, 4H) f32
        "fc_w": u(ks[1], (hid_dim, output_dim)).astype(jnp.bfloat16),  # (H, O)
        "fc_b": u(ks[2], (1, output_dim)),                     # (1, O) f32
    }


# ----------------------------------------------------------------------------
# Pure-JAX reference (same math / same bf16 weight rounding) for correctness
# ----------------------------------------------------------------------------
def decoder_forward_ref(params, tokens, hidden):
    h0, c0 = hidden
    L, B, H = h0.shape
    E = params["emb"].shape[1]
    Dmax = params["w"].shape[1] - H
    hi = jax.lax.Precision.HIGHEST

    x = jnp.take(params["emb"], tokens, axis=0)                      # (B, E)
    x = jnp.pad(x, ((0, 0), (0, Dmax - E)))
    hs, cs = [], []
    for l in range(L):
        xh = jnp.concatenate([x, h0[l]], axis=1)
        xh = xh.astype(jnp.bfloat16).astype(jnp.float32)             # match MXU operand rounding
        z = jnp.dot(xh, params["w"][l].astype(jnp.float32), precision=hi) + params["b"][l]
        i = jax.nn.sigmoid(z[:, 0 * H:1 * H])
        f = jax.nn.sigmoid(z[:, 1 * H:2 * H])
        g = jnp.tanh(z[:, 2 * H:3 * H])
        o = jax.nn.sigmoid(z[:, 3 * H:4 * H])
        c_new = f * c0[l] + i * g
        h_new = o * jnp.tanh(c_new)
        hs.append(h_new)
        cs.append(c_new)
        x = jnp.pad(h_new, ((0, 0), (0, Dmax - H)))
    h_top = hs[-1].astype(jnp.bfloat16).astype(jnp.float32)
    pred = jnp.dot(h_top, params["fc_w"].astype(jnp.float32), precision=hi) + params["fc_b"]
    return pred, (jnp.stack(hs), jnp.stack(cs))


if __name__ == "__main__":
    OUTPUT_DIM, EMB_DIM, HID_DIM, N_LAYERS = 16, 32, 32, 2
    BATCH = 2

    key = jax.random.PRNGKey(0)
    k_par, k_tok, k_h, k_c = jax.random.split(key, 4)

    params = init_params(k_par, OUTPUT_DIM, EMB_DIM, HID_DIM, N_LAYERS)
    tokens = jax.random.randint(k_tok, (BATCH,), 0, OUTPUT_DIM, dtype=jnp.int32)
    h0 = jax.random.normal(k_h, (N_LAYERS, BATCH, HID_DIM), jnp.float32)
    c0 = jax.random.normal(k_c, (N_LAYERS, BATCH, HID_DIM), jnp.float32)

    pred, (h_n, c_n) = decoder_forward(params, tokens, (h0, c0))
    jax.block_until_ready((pred, h_n, c_n))

    # sanity check vs. pure-JAX reference (same bf16-rounded weights)
    pred_r, (h_r, c_r) = decoder_forward_ref(params, tokens, (h0, c0))
    assert pred.shape == (BATCH, OUTPUT_DIM)
    assert h_n.shape == (N_LAYERS, BATCH, HID_DIM)
    assert c_n.shape == (N_LAYERS, BATCH, HID_DIM)
    tol = 2e-3
    assert jnp.allclose(pred, pred_r, atol=tol), float(jnp.max(jnp.abs(pred - pred_r)))
    assert jnp.allclose(h_n, h_r, atol=tol), float(jnp.max(jnp.abs(h_n - h_r)))
    assert jnp.allclose(c_n, c_r, atol=tol), float(jnp.max(jnp.abs(c_n - c_r)))

    print("KERNEL_OK")
</pallas_src>

<mosaic_0001>
module attributes {stable_mosaic.version = 11 : i64} {
  func.func @_decoder_step_kernel(%arg0: i32, %arg1: memref<2x32xf32, #tpu.memory_space<vmem>>, %arg2: memref<2x64x128xbf16, #tpu.memory_space<vmem>>, %arg3: memref<2x1x128xf32, #tpu.memory_space<vmem>>, %arg4: memref<2x2x32xf32, #tpu.memory_space<vmem>>, %arg5: memref<2x2x32xf32, #tpu.memory_space<vmem>>, %arg6: memref<32x16xbf16, #tpu.memory_space<vmem>>, %arg7: memref<1x16xf32, #tpu.memory_space<vmem>>, %arg8: memref<2x16xf32, #tpu.memory_space<vmem>>, %arg9: memref<2x2x32xf32, #tpu.memory_space<vmem>>, %arg10: memref<2x2x32xf32, #tpu.memory_space<vmem>>, %arg11: memref<2x64xf32, #tpu.memory_space<vmem>>) attributes {dimension_semantics = [#tpu.dimension_semantics<arbitrary>], iteration_bounds = array<i64: 1>, scalar_prefetch = 0 : i64, scratch_operands = 1 : i64, tpu.core_type = #tpu.core_type<tc>, window_params = [{pipeline_mode = #tpu.pipeline_mode<synchronous>, transform_indices = @transform_0, window_bounds = array<i64: 2, 32>}, {pipeline_mode = #tpu.pipeline_mode<synchronous>, transform_indices = @transform_1, window_bounds = array<i64: 2, 64, 128>}, {pipeline_mode = #tpu.pipeline_mode<synchronous>, transform_indices = @transform_2, window_bounds = array<i64: 2, 1, 128>}, {pipeline_mode = #tpu.pipeline_mode<synchronous>, transform_indices = @transform_3, window_bounds = array<i64: 2, 2, 32>}, {pipeline_mode = #tpu.pipeline_mode<synchronous>, transform_indices = @transform_4, window_bounds = array<i64: 2, 2, 32>}, {pipeline_mode = #tpu.pipeline_mode<synchronous>, transform_indices = @transform_5, window_bounds = array<i64: 32, 16>}, {pipeline_mode = #tpu.pipeline_mode<synchronous>, transform_indices = @transform_6, window_bounds = array<i64: 1, 16>}, {pipeline_mode = #tpu.pipeline_mode<synchronous>, transform_indices = @transform_7, window_bounds = array<i64: 2, 16>}, {pipeline_mode = #tpu.pipeline_mode<synchronous>, transform_indices = @transform_8, window_bounds = array<i64: 2, 2, 32>}, {pipeline_mode = #tpu.pipeline_mode<synchronous>, transform_indices = @transform_9, window_bounds = array<i64: 2, 2, 32>}]} {
    %cst = arith.constant 0.000000e+00 : f32
    %0 = vector.broadcast %cst : f32 to vector<2x64xf32>
    %c0 = arith.constant 0 : index
    %c0_0 = arith.constant 0 : index
    %1 = vector.load %arg11[%c0, %c0_0] : memref<2x64xf32, #tpu.memory_space<vmem>>, vector<2x64xf32>
    tpu.vector_store %arg11[%c0, %c0_0], %0 {strides = array<i32>} : memref<2x64xf32, #tpu.memory_space<vmem>>, vector<2x64xf32>,
    %c0_1 = arith.constant 0 : index
    %c0_2 = arith.constant 0 : index
    %2 = vector.load %arg1[%c0_1, %c0_2] : memref<2x32xf32, #tpu.memory_space<vmem>>, vector<2x32xf32>
    %c0_3 = arith.constant 0 : index
    %c0_4 = arith.constant 0 : index
    %3 = vector.load %arg11[%c0_3, %c0_4] : memref<2x64xf32, #tpu.memory_space<vmem>>, vector<2x32xf32>
    tpu.vector_store %arg11[%c0_3, %c0_4], %2 {strides = array<i32>} : memref<2x64xf32, #tpu.memory_space<vmem>>, vector<2x32xf32>,
    %cst_5 = arith.constant 0.000000e+00 : f32
    %4 = vector.broadcast %cst_5 : f32 to vector<2x32xf32>
    %c0_i32 = arith.constant 0 : i32
    %5 = arith.index_cast %c0_i32 : i32 to index
    %c0_6 = arith.constant 0 : index
    %c0_7 = arith.constant 0 : index
    %6 = vector.load %arg4[%5, %c0_6, %c0_7] : memref<2x2x32xf32, #tpu.memory_space<vmem>>, vector<1x2x32xf32>
    %7 = vector.shape_cast %6 : vector<1x2x32xf32> to vector<2x32xf32>
    %8 = arith.index_cast %c0_i32 : i32 to index
    %c0_8 = arith.constant 0 : index
    %c0_9 = arith.constant 0 : index
    %9 = vector.load %arg5[%8, %c0_8, %c0_9] : memref<2x2x32xf32, #tpu.memory_space<vmem>>, vector<1x2x32xf32>
    %10 = vector.shape_cast %9 : vector<1x2x32xf32> to vector<2x32xf32>
    %c0_10 = arith.constant 0 : index
    %c32 = arith.constant 32 : index
    %11 = vector.load %arg11[%c0_10, %c32] : memref<2x64xf32, #tpu.memory_space<vmem>>, vector<2x32xf32>
    tpu.vector_store %arg11[%c0_10, %c32], %7 {strides = array<i32>} : memref<2x64xf32, #tpu.memory_space<vmem>>, vector<2x32xf32>,
    %c0_11 = arith.constant 0 : index
    %c0_12 = arith.constant 0 : index
    %12 = vector.load %arg11[%c0_11, %c0_12] : memref<2x64xf32, #tpu.memory_space<vmem>>, vector<2x64xf32>
    %13 = arith.truncf %12 : vector<2x64xf32> to vector<2x64xbf16>
    %14 = arith.index_cast %c0_i32 : i32 to index
    %c0_13 = arith.constant 0 : index
    %c0_14 = arith.constant 0 : index
    %15 = vector.load %arg2[%14, %c0_13, %c0_14] : memref<2x64x128xbf16, #tpu.memory_space<vmem>>, vector<1x64x128xbf16>
    %16 = vector.shape_cast %15 : vector<1x64x128xbf16> to vector<64x128xbf16>
    %cst_15 = arith.constant dense<0.000000e+00> : vector<2x128xf32>
    %17 = tpu.matmul %13, %16, %cst_15 {dimension_numbers = #tpu.dot_dimension_numbers<[1], [0], [0], [1], [0, 0, 1, 1], [], []>} : vector<2x64xbf16>, vector<64x128xbf16>, vector<2x128xf32> -> vector<2x128xf32>
    %18 = arith.index_cast %c0_i32 : i32 to index
    %c0_16 = arith.constant 0 : index
    %c0_17 = arith.constant 0 : index
    %19 = vector.load %arg3[%18, %c0_16, %c0_17] : memref<2x1x128xf32, #tpu.memory_space<vmem>>, vector<1x1x128xf32>
    %20 = vector.shape_cast %19 : vector<1x1x128xf32> to vector<1x128xf32>
    %21 = vector.broadcast %20 : vector<1x128xf32> to vector<2x128xf32>
    %22 = arith.addf %17, %21 : vector<2x128xf32>
    %23 = vector.extract_strided_slice %22 {offsets = [0, 0], sizes = [2, 32], strides = [1, 1]} : vector<2x128xf32> to vector<2x32xf32>
    %24 = arith.negf %23 : vector<2x32xf32>
    %25 = math.exp %24 : vector<2x32xf32>
    %cst_18 = arith.constant 1.000000e+00 : f32
    %26 = vector.broadcast %cst_18 : f32 to vector<2x32xf32>
    %27 = arith.addf %26, %25 : vector<2x32xf32>
    %28 = arith.divf %26, %27 : vector<2x32xf32>
    %29 = vector.extract_strided_slice %22 {offsets = [0, 32], sizes = [2, 32], strides = [1, 1]} : vector<2x128xf32> to vector<2x32xf32>
    %30 = arith.negf %29 : vector<2x32xf32>
    %31 = math.exp %30 : vector<2x32xf32>
    %cst_19 = arith.constant 1.000000e+00 : f32
    %32 = vector.broadcast %cst_19 : f32 to vector<2x32xf32>
    %33 = arith.addf %32, %31 : vector<2x32xf32>
    %34 = arith.divf %32, %33 : vector<2x32xf32>
    %35 = vector.extract_strided_slice %22 {offsets = [0, 64], sizes = [2, 32], strides = [1, 1]} : vector<2x128xf32> to vector<2x32xf32>
    %36 = math.tanh %35 : vector<2x32xf32>
    %37 = vector.extract_strided_slice %22 {offsets = [0, 96], sizes = [2, 32], strides = [1, 1]} : vector<2x128xf32> to vector<2x32xf32>
    %38 = arith.negf %37 : vector<2x32xf32>
    %39 = math.exp %38 : vector<2x32xf32>
    %cst_20 = arith.constant 1.000000e+00 : f32
    %40 = vector.broadcast %cst_20 : f32 to vector<2x32xf32>
    %41 = arith.addf %40, %39 : vector<2x32xf32>
    %42 = arith.divf %40, %41 : vector<2x32xf32>
    %43 = arith.mulf %34, %10 : vector<2x32xf32>
    %44 = arith.mulf %28, %36 : vector<2x32xf32>
    %45 = arith.addf %43, %44 : vector<2x32xf32>
    %46 = math.tanh %45 : vector<2x32xf32>
    %47 = arith.mulf %42, %46 : vector<2x32xf32>
    %48 = arith.index_cast %c0_i32 : i32 to index
    %c0_21 = arith.constant 0 : index
    %c0_22 = arith.constant 0 : index
    %49 = vector.load %arg9[%48, %c0_21, %c0_22] : memref<2x2x32xf32, #tpu.memory_space<vmem>>, vector<1x2x32xf32>
    %50 = vector.shape_cast %49 : vector<1x2x32xf32> to vector<2x32xf32>
    %51 = vector.shape_cast %47 : vector<2x32xf32> to vector<1x2x32xf32>
    tpu.vector_store %arg9[%48, %c0_21, %c0_22], %51 {strides = array<i32>} : memref<2x2x32xf32, #tpu.memory_space<vmem>>, vector<1x2x32xf32>,
    %52 = arith.index_cast %c0_i32 : i32 to index
    %c0_23 = arith.constant 0 : index
    %c0_24 = arith.constant 0 : index
    %53 = vector.load %arg10[%52, %c0_23, %c0_24] : memref<2x2x32xf32, #tpu.memory_space<vmem>>, vector<1x2x32xf32>
    %54 = vector.shape_cast %53 : vector<1x2x32xf32> to vector<2x32xf32>
    %55 = vector.shape_cast %45 : vector<2x32xf32> to vector<1x2x32xf32>
    tpu.vector_store %arg10[%52, %c0_23, %c0_24], %55 {strides = array<i32>} : memref<2x2x32xf32, #tpu.memory_space<vmem>>, vector<1x2x32xf32>,
    %c0_25 = arith.constant 0 : index
    %c0_26 = arith.constant 0 : index
    %56 = vector.load %arg11[%c0_25, %c0_26] : memref<2x64xf32, #tpu.memory_space<vmem>>, vector<2x32xf32>
    tpu.vector_store %arg11[%c0_25, %c0_26], %47 {strides = array<i32>} : memref<2x64xf32, #tpu.memory_space<vmem>>, vector<2x32xf32>,
    %c1_i32 = arith.constant 1 : i32
    %57 = arith.index_cast %c1_i32 : i32 to index
    %c0_27 = arith.constant 0 : index
    %c0_28 = arith.constant 0 : index
    %58 = vector.load %arg4[%57, %c0_27, %c0_28] : memref<2x2x32xf32, #tpu.memory_space<vmem>>, vector<1x2x32xf32>
    %59 = vector.shape_cast %58 : vector<1x2x32xf32> to vector<2x32xf32>
    %60 = arith.index_cast %c1_i32 : i32 to index
    %c0_29 = arith.constant 0 : index
    %c0_30 = arith.constant 0 : index
    %61 = vector.load %arg5[%60, %c0_29, %c0_30] : memref<2x2x32xf32, #tpu.memory_space<vmem>>, vector<1x2x32xf32>
    %62 = vector.shape_cast %61 : vector<1x2x32xf32> to vector<2x32xf32>
    %c0_31 = arith.constant 0 : index
    %c32_32 = arith.constant 32 : index
    %63 = vector.load %arg11[%c0_31, %c32_32] : memref<2x64xf32, #tpu.memory_space<vmem>>, vector<2x32xf32>
    tpu.vector_store %arg11[%c0_31, %c32_32], %59 {strides = array<i32>} : memref<2x64xf32, #tpu.memory_space<vmem>>, vector<2x32xf32>,
    %c0_33 = arith.constant 0 : index
    %c0_34 = arith.constant 0 : index
    %64 = vector.load %arg11[%c0_33, %c0_34] : memref<2x64xf32, #tpu.memory_space<vmem>>, vector<2x64xf32>
    %65 = arith.truncf %64 : vector<2x64xf32> to vector<2x64xbf16>
    %66 = arith.index_cast %c1_i32 : i32 to index
    %c0_35 = arith.constant 0 : index
    %c0_36 = arith.constant 0 : index
    %67 = vector.load %arg2[%66, %c0_35, %c0_36] : memref<2x64x128xbf16, #tpu.memory_space<vmem>>, vector<1x64x128xbf16>
    %68 = vector.shape_cast %67 : vector<1x64x128xbf16> to vector<64x128xbf16>
    %cst_37 = arith.constant dense<0.000000e+00> : vector<2x128xf32>
    %69 = tpu.matmul %65, %68, %cst_37 {dimension_numbers = #tpu.dot_dimension_numbers<[1], [0], [0], [1], [0, 0, 1, 1], [], []>} : vector<2x64xbf16>, vector<64x128xbf16>, vector<2x128xf32> -> vector<2x128xf32>
    %70 = arith.index_cast %c1_i32 : i32 to index
    %c0_38 = arith.constant 0 : index
    %c0_39 = arith.constant 0 : index
    %71 = vector.load %arg3[%70, %c0_38, %c0_39] : memref<2x1x128xf32, #tpu.memory_space<vmem>>, vector<1x1x128xf32>
    %72 = vector.shape_cast %71 : vector<1x1x128xf32> to vector<1x128xf32>
    %73 = vector.broadcast %72 : vector<1x128xf32> to vector<2x128xf32>
    %74 = arith.addf %69, %73 : vector<2x128xf32>
    %75 = vector.extract_strided_slice %74 {offsets = [0, 0], sizes = [2, 32], strides = [1, 1]} : vector<2x128xf32> to vector<2x32xf32>
    %76 = arith.negf %75 : vector<2x32xf32>
    %77 = math.exp %76 : vector<2x32xf32>
    %cst_40 = arith.constant 1.000000e+00 : f32
    %78 = vector.broadcast %cst_40 : f32 to vector<2x32xf32>
    %79 = arith.addf %78, %77 : vector<2x32xf32>
    %80 = arith.divf %78, %79 : vector<2x32xf32>
    %81 = vector.extract_strided_slice %74 {offsets = [0, 32], sizes = [2, 32], strides = [1, 1]} : vector<2x128xf32> to vector<2x32xf32>
    %82 = arith.negf %81 : vector<2x32xf32>
    %83 = math.exp %82 : vector<2x32xf32>
    %cst_41 = arith.constant 1.000000e+00 : f32
    %84 = vector.broadcast %cst_41 : f32 to vector<2x32xf32>
    %85 = arith.addf %84, %83 : vector<2x32xf32>
    %86 = arith.divf %84, %85 : vector<2x32xf32>
    %87 = vector.extract_strided_slice %74 {offsets = [0, 64], sizes = [2, 32], strides = [1, 1]} : vector<2x128xf32> to vector<2x32xf32>
    %88 = math.tanh %87 : vector<2x32xf32>
    %89 = vector.extract_strided_slice %74 {offsets = [0, 96], sizes = [2, 32], strides = [1, 1]} : vector<2x128xf32> to vector<2x32xf32>
    %90 = arith.negf %89 : vector<2x32xf32>
    %91 = math.exp %90 : vector<2x32xf32>
    %cst_42 = arith.constant 1.000000e+00 : f32
    %92 = vector.broadcast %cst_42 : f32 to vector<2x32xf32>
    %93 = arith.addf %92, %91 : vector<2x32xf32>
    %94 = arith.divf %92, %93 : vector<2x32xf32>
    %95 = arith.mulf %86, %62 : vector<2x32xf32>
    %96 = arith.mulf %80, %88 : vector<2x32xf32>
    %97 = arith.addf %95, %96 : vector<2x32xf32>
    %98 = math.tanh %97 : vector<2x32xf32>
    %99 = arith.mulf %94, %98 : vector<2x32xf32>
    %100 = arith.index_cast %c1_i32 : i32 to index
    %c0_43 = arith.constant 0 : index
    %c0_44 = arith.constant 0 : index
    %101 = vector.load %arg9[%100, %c0_43, %c0_44] : memref<2x2x32xf32, #tpu.memory_space<vmem>>, vector<1x2x32xf32>
    %102 = vector.shape_cast %101 : vector<1x2x32xf32> to vector<2x32xf32>
    %103 = vector.shape_cast %99 : vector<2x32xf32> to vector<1x2x32xf32>
    tpu.vector_store %arg9[%100, %c0_43, %c0_44], %103 {strides = array<i32>} : memref<2x2x32xf32, #tpu.memory_space<vmem>>, vector<1x2x32xf32>,
    %104 = arith.index_cast %c1_i32 : i32 to index
    %c0_45 = arith.constant 0 : index
    %c0_46 = arith.constant 0 : index
    %105 = vector.load %arg10[%104, %c0_45, %c0_46] : memref<2x2x32xf32, #tpu.memory_space<vmem>>, vector<1x2x32xf32>
    %106 = vector.shape_cast %105 : vector<1x2x32xf32> to vector<2x32xf32>
    %107 = vector.shape_cast %97 : vector<2x32xf32> to vector<1x2x32xf32>
    tpu.vector_store %arg10[%104, %c0_45, %c0_46], %107 {strides = array<i32>} : memref<2x2x32xf32, #tpu.memory_space<vmem>>, vector<1x2x32xf32>,
    %c0_47 = arith.constant 0 : index
    %c0_48 = arith.constant 0 : index
    %108 = vector.load %arg11[%c0_47, %c0_48] : memref<2x64xf32, #tpu.memory_space<vmem>>, vector<2x32xf32>
    tpu.vector_store %arg11[%c0_47, %c0_48], %99 {strides = array<i32>} : memref<2x64xf32, #tpu.memory_space<vmem>>, vector<2x32xf32>,
    %c2_i32 = arith.constant 2 : i32
    %109 = arith.truncf %99 : vector<2x32xf32> to vector<2x32xbf16>
    %c0_49 = arith.constant 0 : index
    %c0_50 = arith.constant 0 : index
    %110 = vector.load %arg6[%c0_49, %c0_50] : memref<32x16xbf16, #tpu.memory_space<vmem>>, vector<32x16xbf16>
    %cst_51 = arith.constant dense<0.000000e+00> : vector<2x16xf32>
    %111 = tpu.matmul %109, %110, %cst_51 {dimension_numbers = #tpu.dot_dimension_numbers<[1], [0], [0], [1], [0, 0, 1, 1], [], []>} : vector<2x32xbf16>, vector<32x16xbf16>, vector<2x16xf32> -> vector<2x16xf32>
    %c0_52 = arith.constant 0 : index
    %c0_53 = arith.constant 0 : index
    %112 = vector.load %arg7[%c0_52, %c0_53] : memref<1x16xf32, #tpu.memory_space<vmem>>, vector<1x16xf32>
    %113 = vector.broadcast %112 : vector<1x16xf32> to vector<2x16xf32>
    %114 = arith.addf %111, %113 : vector<2x16xf32>
    %c0_54 = arith.constant 0 : index
    %c0_55 = arith.constant 0 : index
    %115 = vector.load %arg8[%c0_54, %c0_55] : memref<2x16xf32, #tpu.memory_space<vmem>>, vector<2x16xf32>
    tpu.vector_store %arg8[%c0_54, %c0_55], %114 {strides = array<i32>} : memref<2x16xf32, #tpu.memory_space<vmem>>, vector<2x16xf32>,
    return
  }
  func.func @transform_0(%arg0: i32) -> (i32, i32) {
    %c0_i32 = arith.constant 0 : i32
    %c0_i32_0 = arith.constant 0 : i32
    %c0_i32_1 = arith.constant 0 : i32
    return %c0_i32, %c0_i32_0 : i32, i32
  }
  func.func @transform_1(%arg0: i32) -> (i32, i32, i32) {
    %c0_i32 = arith.constant 0 : i32
    %c0_i32_0 = arith.constant 0 : i32
    %c0_i32_1 = arith.constant 0 : i32
    %c0_i32_2 = arith.constant 0 : i32
    return %c0_i32, %c0_i32_0, %c0_i32_1 : i32, i32, i32
  }
  func.func @transform_2(%arg0: i32) -> (i32, i32, i32) {
    %c0_i32 = arith.constant 0 : i32
    %c0_i32_0 = arith.constant 0 : i32
    %c0_i32_1 = arith.constant 0 : i32
    %c0_i32_2 = arith.constant 0 : i32
    return %c0_i32, %c0_i32_0, %c0_i32_1 : i32, i32, i32
  }
  func.func @transform_3(%arg0: i32) -> (i32, i32, i32) {
    %c0_i32 = arith.constant 0 : i32
    %c0_i32_0 = arith.constant 0 : i32
    %c0_i32_1 = arith.constant 0 : i32
    %c0_i32_2 = arith.constant 0 : i32
    return %c0_i32, %c0_i32_0, %c0_i32_1 : i32, i32, i32
  }
  func.func @transform_4(%arg0: i32) -> (i32, i32, i32) {
    %c0_i32 = arith.constant 0 : i32
    %c0_i32_0 = arith.constant 0 : i32
    %c0_i32_1 = arith.constant 0 : i32
    %c0_i32_2 = arith.constant 0 : i32
    return %c0_i32, %c0_i32_0, %c0_i32_1 : i32, i32, i32
  }
  func.func @transform_5(%arg0: i32) -> (i32, i32) {
    %c0_i32 = arith.constant 0 : i32
    %c0_i32_0 = arith.constant 0 : i32
    %c0_i32_1 = arith.constant 0 : i32
    return %c0_i32, %c0_i32_0 : i32, i32
  }
  func.func @transform_6(%arg0: i32) -> (i32, i32) {
    %c0_i32 = arith.constant 0 : i32
    %c0_i32_0 = arith.constant 0 : i32
    %c0_i32_1 = arith.constant 0 : i32
    return %c0_i32, %c0_i32_0 : i32, i32
  }
  func.func @transform_7(%arg0: i32) -> (i32, i32) {
    %c0_i32 = arith.constant 0 : i32
    %c0_i32_0 = arith.constant 0 : i32
    %c0_i32_1 = arith.constant 0 : i32
    return %c0_i32, %c0_i32_0 : i32, i32
  }
  func.func @transform_8(%arg0: i32) -> (i32, i32, i32) {
    %c0_i32 = arith.constant 0 : i32
    %c0_i32_0 = arith.constant 0 : i32
    %c0_i32_1 = arith.constant 0 : i32
    %c0_i32_2 = arith.constant 0 : i32
    return %c0_i32, %c0_i32_0, %c0_i32_1 : i32, i32, i32
  }
  func.func @transform_9(%arg0: i32) -> (i32, i32, i32) {
    %c0_i32 = arith.constant 0 : i32
    %c0_i32_0 = arith.constant 0 : i32
    %c0_i32_1 = arith.constant 0 : i32
    %c0_i32_2 = arith.constant 0 : i32
    return %c0_i32, %c0_i32_0, %c0_i32_1 : i32, i32, i32
  }
}

</mosaic_0001>

<bundles_post_ra>
// kernel: decoder_forward.1
= control target key start
LH: loop header
LB: loop body
LE: loop exit
PB: predicated region body
PF: predicated region fallthrough
CT: control target
= control target key end

     0   :  { %15 = vsyncpa [#allocation4], 0  ;;  %s703_s0 = inlined_call_operand.vmem [shape: f32[2,32], index: 0, kind: input, shape index: {}]   ;;  %s704_s1 = inlined_call_operand.hbm [shape: bf16[2,64,128], index: 1, kind: input, shape index: {}]   ;;  %s705_s2 = inlined_call_operand.vmem [shape: f32[2,1,128], index: 2, kind: input, shape index: {}]   ;;  %s706_s3 = inlined_call_operand.vmem [shape: f32[2,2,32], index: 3, kind: input, shape index: {}]   ;;  %s707_s4 = inlined_call_operand.vmem [shape: f32[2,2,32], index: 4, kind: input, shape index: {}]   ;;  %s708_s5 = inlined_call_operand.vmem [shape: bf16[32,16], index: 5, kind: input, shape index: {}]   ;;  %s709_s6 = inlined_call_operand.vmem [shape: f32[1,16], index: 6, kind: input, shape index: {}]   ;;  %s710_s7 = inlined_call_operand.hbm [shape: f32[2,16], index: 7, kind: output, shape index: {0}]   ;;  %s711_s8 = inlined_call_operand.hbm [shape: f32[2,2,32], index: 8, kind: output, shape index: {1}]   ;;  %s712_s9 = inlined_call_operand.hbm [shape: f32[2,2,32], index: 9, kind: output, shape index: {2}]  }
   0x1   :  { %16 = vsyncpa [#allocation5], 0 }
   0x2   :  { %17 = vsyncpa [#allocation8], 0  ;;  %s24_s11 = sshll.u32 %s704_s1, 4  ;;  %s571_s12 = smov [#allocation3]   ;;  %s25_s11 = int_to_ptr.hbm [resolvable:$true] %s24_s11 }
   0x3   :  { %s26_s13 = sshll.u32 %s571_s12, 4  ;;  %s572_s14 = smov 64   ;;  %s27_s13 = int_to_ptr.vmem [resolvable:$true] %s26_s13 }
   0x4   :  { %s573_s15 = smov 4  }
   0x5   :  { %32 = dma.hbm_to_vmem [thread:$0]  %s25_s11, 1024, %s27_s13, [#allocation4], %s572_s14, %s572_s14, %s573_s15  }
   0x6   :  { %565 = dma.done.wait [#allocation4], 1024  }
   0x7   :  { %566 = vsyncadd [#allocation4], 4294966272  ;;  %vm48_vm0 = vcmask 517120   ;;  %v574_v0 = vmov 0.0   ;;  %v53_v1 = vld [vmem:[%s706_s3] sm:$0x3] }
   0x8   :  { %49 = vst.msk [vmem:[#allocation2] sm:$0x3] %vm48_vm0, %v574_v0  ;;  %v433_v2 = vld [vmem:[#allocation3 + $0x18] sm:$0xff]  ;;  %s575_s1 = smov 32   ;;  %v432_v3 = vld [vmem:[#allocation3 + $0x10] sm:$0xff]  ;;  %vm51_vm1 = vcmask 254976  }
   0x9   :  { %56 = vrot.lane.b32.xlu0 %v53_v1, %s575_s1  ;;  %107 = vmatpush.bf16.msra.mxu0 %v433_v2  ;;  %v50_v4 = vld [vmem:[%s703_s0] sm:$0x3]  ;;  %v431_v5 = vld [vmem:[#allocation3 + $0x8] sm:$0xff]  ;;  %v430_v6 = vld [vmem:[#allocation3] sm:$0xff]  ;;  %vm59_vm2 = vcmask 517376   ;;  %vm99_vm3 = vcmask 523264  }
   0xa   :  { %52 = vst.msk [vmem:[#allocation2] sm:$0x3] %vm51_vm1, %v50_v4  ;;  %v54_v7 = vld [vmem:[%s707_s4] sm:$0x3]  ;;  %v400_v31 = vld [vmem:[%s706_s3 + $0x2] sm:$0x3] }
   0xb   :  { %137 = vrot.lane.b32.xlu1 %v54_v7, %s575_s1  ;;  %v450_v11 = vld [vmem:[%s705_s2] ss:$0 sm:$0xff]  ;;  %v436_v40 = vld [vmem:[#allocation3 + $0x30] sm:$0xff]  ;;  %v435_v41 = vld [vmem:[#allocation3 + $0x28] sm:$0xff]  ;;  %vm311_vm12 = vcmask 261120   ;;  %s347_s11 = sshll.u32 %s711_s8, 4  ;;  %s348_s11 = int_to_ptr.hbm [resolvable:$true] %s347_s11 }
   0xc   :  { %v437_v37 = vld [vmem:[#allocation3 + $0x38] sm:$0xff]  ;;  %v434_v42 = vld [vmem:[#allocation3 + $0x20] sm:$0xff]  ;;  %s577_s12 = smov [#allocation7]   ;;  %s360_s18 = sshll.u32 %s712_s9, 4  ;;  %vm328_vm13 = vcmask 123904   ;;  %s361_s18 = int_to_ptr.hbm [resolvable:$true] %s360_s18 }
   0xd   :  { %108 = vmatpush.bf16.msra.mxu0 %v432_v3  ;;  %224 = vmatpush.bf16.msra.mxu1 %v437_v37  ;;  %v401_v43 = vld [vmem:[%s707_s4 + $0x2] sm:$0x3]  ;;  %v451_v48 = vld [vmem:[%s705_s2 + $0x1] ss:$0 sm:$0xff]  ;;  %s576_s2 = smov 96   ;;  %s345_s13 = sshll.u32 %s577_s12, 4  ;;  %s346_s13 = int_to_ptr.vmem [resolvable:$true] %s345_s13 }
   0xe   :  { %s579_s19 = smov 2   ;;  %s580_s9 = smov [#allocation6]  }
   0xf   :  { %s335_s21 = sshll.u32 %s580_s9, 4  ;;  %s337_s23 = sshll.u32 %s710_s7, 4  ;;  %s336_s21 = int_to_ptr.vmem [resolvable:$true] %s335_s21  ;;  %s338_s23 = int_to_ptr.hbm [resolvable:$true] %s337_s23 }
  0x11   :  { %109 = vmatpush.bf16.msra.mxu0 %v431_v5  ;;  %225 = vmatpush.bf16.msra.mxu1 %v436_v40 }
  0x15   :  { %110 = vmatpush.bf16.msra.mxu0 %v430_v6  ;;  %226 = vmatpush.bf16.msra.mxu1 %v435_v41 }
  0x19   :  { %227 = vmatpush.bf16.msra.mxu1 %v434_v42 }
  0x7b   :  { %v57_v8 = vpop.permute.xlu0 %56 }
  0x7c   :  { %60 = vst.msk [vmem:[#allocation2] sm:$0x3] %vm59_vm2, %v57_v8 }
  0x7d   :  { %v138_v32 = vpop.permute.xlu1 %137 }
  0x83   :  { %v61_v9 = vld [vmem:[#allocation2] sm:$0x3] }
  0x84   :  { %v62_v10 = vpack.c.bf16 %v61_v9, %v61_v9  ;;  %v439_v9 = vld [vmem:[%s708_s5 + $0x8] sm:$0xff] }
  0x85   :  { %321 = vmatpush.bf16.msra.mxu2 %v439_v9 }
  0x86   :  { %398 = vmatmul.msk.bf16.vlgmr.msra.gmra.mxu0 %vm99_vm3, %v62_v10  ;;  %v438_v10 = vld [vmem:[%s708_s5] sm:$0xff] }
  0x89   :  { %322 = vmatpush.bf16.msra.mxu2 %v438_v10 }
 0x103   :  { %v112_v12 = vpop.f32.mrf.mxu0 }
 0x104   :  { %v113_v13 = vadd.f32 %v450_v11, %v112_v12 }
 0x106   :  { %453 = vtanh.f32 %v113_v13  ;;  %v399_v16 = vmul.f32 -1.442695, %v113_v13 }
 0x108   :  { %455 = vpow2.f32 %v399_v16 }
 0x10b   :  { %v114_v14 = vpop.f32.mrf.mxu0 }
 0x10c   :  { %v454_v15 = vpop.eup %453 }
 0x10d   :  { %142 = vrot.lane.b32.xlu0 %v454_v15, %s572_s14 }
 0x10e   :  { %v456_v17 = vpop.eup %455 }
 0x10f   :  { %v119_v18 = vadd.f32 1.0, %v456_v17 }
 0x111   :  { %457 = vrcp.f32 %v119_v18  ;;  %v131_v24 = vand.u32 2147483648, %v119_v18  ;;  %vm125_vm5 = vweird.f32 %v119_v18  ;;  %v129_v25 = vand.u32 2147483647, %v119_v18 }
 0x113   :  { %v132_v27 = vor.u32 1.1754944e-38, %v131_v24  ;;  %vm130_vm7 = vcmp.eq.f32.partialorder %v129_v25, 8.507059e+37 }
 0x115   :  { %173 = vrot.lane.b32.xlu0 %v400_v31, %s575_s1 }
 0x117   :  { %v458_v19 = vpop.eup %457 }
 0x118   :  { %v121_v20 = vmul.f32 %v458_v19, %v119_v18  ;;  %vm126_vm4 = vweird.f32 %v458_v19  ;;  %v452_v18 = vld [vmem:[%s709_s6] ss:$0 sm:$0xff] }
 0x119   :  { %vm127_vm6 = vmor %vm125_vm5, %vm126_vm4 }
 0x11a   :  { %v122_v21 = vsub.f32 1.0, %v121_v20 }
 0x11c   :  { %v123_v22 = vmul.f32 %v458_v19, %v122_v21 }
 0x11e   :  { %v124_v23 = vadd.f32 %v458_v19, %v123_v22 }
 0x120   :  { %v128_v26 = vsel %vm127_vm6, %v458_v19, %v124_v23 }
 0x121   :  { %v133_v28 = vsel %vm130_vm7, %v132_v27, %v128_v26 }
 0x122   :  { %v140_v33 = vmul.f32 %v138_v32, %v133_v28 }
 0x17f   :  { %v143_v29 = vpop.permute.xlu0 %142 }
 0x180   :  { %v145_v30 = vmul.f32 %v143_v29, %v133_v28 }
 0x182   :  { %147 = vrot.lane.b32.xlu1 %v145_v30, %s575_s1 }
 0x187   :  { %v174_v45 = vpop.permute.xlu0 %173 }
 0x1f4   :  { %v148_v34 = vpop.permute.xlu1 %147 }
 0x1f5   :  { %v150_v35 = vadd.f32 %v148_v34, %v140_v33 }
 0x1f7   :  { %459 = vtanh.f32 %v150_v35 }
 0x1fd   :  { %v460_v36 = vpop.eup %459 }
 0x1fe   :  { %153 = vrot.lane.b32.xlu2 %v460_v36, %s572_s14 }
 0x258   :  { %v154_v38 = vpop.permute.xlu2 %153 }
 0x259   :  { %v156_v39 = vmul.f32 %v154_v38, %v133_v28 }
 0x25b   :  { %158 = vrot.lane.b32.xlu2 %v156_v39, %s575_s1 }
 0x263   :  { %254 = vrot.lane.b32.xlu2 %v401_v43, %s575_s1 }
 0x2b5   :  { %v159_v44 = vpop.permute.xlu2 %158 }
 0x2b6   :  { %161 = vst.msk [vmem:[#allocation7] sm:$0x3] %vm51_vm1, %v159_v44 }
 0x2b7   :  { %167 = vst.msk [vmem:[#allocation2] sm:$0x3] %vm51_vm1, %v159_v44 }
 0x2b8   :  { %176 = vst.msk [vmem:[#allocation2] sm:$0x3] %vm59_vm2, %v174_v45 }
 0x2bd   :  { %v255_v4 = vpop.permute.xlu2 %254 }
 0x2bf   :  { %v177_v46 = vld [vmem:[#allocation2] sm:$0x3] }
 0x2c0   :  { %v178_v47 = vpack.c.bf16 %v177_v46, %v177_v46 }
 0x2c2   :  { %419 = vmatmul.msk.bf16.vlgmr.msra.gmra.mxu1 %vm99_vm3, %v178_v47 }
 0x33f   :  { %v229_v49 = vpop.f32.mrf.mxu1 }
 0x340   :  { %v230_v50 = vadd.f32 %v451_v48, %v229_v49 }
 0x342   :  { %461 = vtanh.f32 %v230_v50  ;;  %v420_v53 = vmul.f32 -1.442695, %v230_v50 }
 0x344   :  { %463 = vpow2.f32 %v420_v53 }
 0x347   :  { %v231_v51 = vpop.f32.mrf.mxu1 }
 0x348   :  { %v462_v52 = vpop.eup %461 }
 0x349   :  { %259 = vrot.lane.b32.xlu1 %v462_v52, %s572_s14 }
 0x34a   :  { %v464_v54 = vpop.eup %463 }
 0x34b   :  { %v236_v55 = vadd.f32 1.0, %v464_v54 }
 0x34d   :  { %465 = vrcp.f32 %v236_v55  ;;  %v248_v61 = vand.u32 2147483648, %v236_v55  ;;  %vm242_vm9 = vweird.f32 %v236_v55  ;;  %v246_v62 = vand.u32 2147483647, %v236_v55 }
 0x34f   :  { %v249_v0 = vor.u32 1.1754944e-38, %v248_v61  ;;  %vm247_vm11 = vcmp.eq.f32.partialorder %v246_v62, 8.507059e+37 }
 0x353   :  { %v466_v56 = vpop.eup %465 }
 0x354   :  { %v238_v57 = vmul.f32 %v466_v56, %v236_v55  ;;  %vm243_vm8 = vweird.f32 %v466_v56 }
 0x355   :  { %vm244_vm10 = vmor %vm242_vm9, %vm243_vm8 }
 0x356   :  { %v239_v58 = vsub.f32 1.0, %v238_v57 }
 0x358   :  { %v240_v59 = vmul.f32 %v466_v56, %v239_v58 }
 0x35a   :  { %v241_v60 = vadd.f32 %v466_v56, %v240_v59 }
 0x35c   :  { %v245_v63 = vsel %vm244_vm10, %v466_v56, %v241_v60 }
 0x35d   :  { %v250_v1 = vsel %vm247_vm11, %v249_v0, %v245_v63 }
 0x35e   :  { %v257_v5 = vmul.f32 %v255_v4, %v250_v1 }
 0x3bb   :  { %v260_v2 = vpop.permute.xlu1 %259 }
 0x3bc   :  { %v262_v3 = vmul.f32 %v260_v2, %v250_v1 }
 0x3be   :  { %264 = vrot.lane.b32.xlu0 %v262_v3, %s575_s1 }
 0x430   :  { %v265_v6 = vpop.permute.xlu0 %264 }
 0x431   :  { %v267_v7 = vadd.f32 %v265_v6, %v257_v5 }
 0x433   :  { %467 = vtanh.f32 %v267_v7 }
 0x439   :  { %v468_v8 = vpop.eup %467 }
 0x43a   :  { %270 = vrot.lane.b32.xlu1 %v468_v8, %s572_s14  ;;  %s578_s14 = smov [#allocation9]  }
 0x43b   :  { %s358_s15 = sshll.u32 %s578_s14, 4  ;;  %s359_s15 = int_to_ptr.vmem [resolvable:$true] %s358_s15 }
 0x442   :  { %163 = vrot.lane.b32.xlu1 %v150_v35, %s576_s2 }
 0x4ac   :  { %v271_v11 = vpop.permute.xlu1 %270 }
 0x4ad   :  { %v273_v12 = vmul.f32 %v271_v11, %v250_v1 }
 0x4af   :  { %v287_v13 = vpack.c.bf16 %v273_v12, %v273_v12  ;;  %275 = vrot.lane.b32.xlu0 %v273_v12, %s575_s1 }
 0x4b1   :  { %297 = vrot.lane.b32.xlu2 %v287_v13, %s575_s1 }
 0x4b4   :  { %v164_v14 = vpop.permute.xlu1 %163 }
 0x4b5   :  { %166 = vst.msk [vmem:[#allocation9] sm:$0x3] %vm51_vm1, %v164_v14 }
 0x4b9   :  { %281 = vrot.lane.b32.xlu2 %v267_v7, %s576_s2 }
 0x50b   :  { %v298_v15 = vpop.permute.xlu2 %297 }
 0x50c   :  { %429 = vmatmul.msk.bf16.vlgmr.msra.gmra.mxu2 %vm311_vm12, %v298_v15 }
 0x513   :  { %v282_v16 = vpop.permute.xlu2 %281 }
 0x514   :  { %285 = vst.msk [vmem:[#allocation9 + $0x2] sm:$0x3] %vm51_vm1, %v282_v16 }
 0x521   :  { %v276_v17 = vpop.permute.xlu0 %275 }
 0x522   :  { %279 = vst.msk [vmem:[#allocation7 + $0x2] sm:$0x3] %vm51_vm1, %v276_v17 }
 0x523   :  { %286 = vst.msk [vmem:[#allocation2] sm:$0x3] %vm51_vm1, %v276_v17  ;;  %353 = dma.vmem_to_hbm [thread:$0]  %s346_s13, 64, %s348_s11, [#allocation8], %s575_s1, %s575_s1, %s579_s19  }
 0x524   :  { %366 = dma.vmem_to_hbm [thread:$0]  %s359_s15, 64, %s361_s18, [#allocation8], %s575_s1, %s575_s1, %s579_s19  }
 0x58f   :  { %v324_v19 = vpop.f32.mrf.mxu2 }
 0x590   :  { %v325_v20 = vadd.f32 %v452_v18, %v324_v19 }
 0x592   :  { %329 = vst.msk [vmem:[#allocation6] sm:$0x3] %vm328_vm13, %v325_v20 }
 0x593   :  { %340 = dma.vmem_to_hbm [thread:$0]  %s336_s21, 32, %s338_s23, [#allocation5]  }
 0x597   :  { %v326_v21 = vpop.f32.mrf.mxu2 }
 0x598   :  { %567 = dma.done.wait [#allocation5], 32  }
 0x599   :  { %568 = vsyncadd [#allocation5], 4294967264 }
 0x59a   :  { %569 = dma.done.wait [#allocation8], 128  }
 0x59b   :  { %570 = vsyncadd [#allocation8], 4294967168 }
 0x59c   :  { %379 = vsyncpa [#allocation4], 1 }
 0x59d   :  { %380 = vsyncpa [#allocation5], 1 }
 0x59e   :  { %381 = vsyncpa [#allocation8], 1 }

</bundles_post_ra>
